<compile_context>
chip_gen: v7x
topology: tpu7x:2x2x1
jax: 0.10.0
libtpu: 0.0.40
codegen_flags: <defaults>
</compile_context>

<pallas_src>
import functools

import jax
import jax.numpy as jnp
from jax.experimental import pallas as pl
from jax.experimental.pallas import tpu as pltpu

LANE = 128          # TPU lane width: output columns padded to a multiple of this
DEF_TILE_E = 256    # edge tile (multiple of 8/16; fills MXU M dim)


def _edge_mlp_kernel(hs_ref, hd_ref, w1s_ref, w1d_ref, b1_ref,
                     w2_ref, b2_ref, w3_ref, b3_ref, o_ref):
    """Fused 3-layer MLP on one tile of edges.

    Layer 1 computes concat([h_src, h_dst]) @ W1 as
        h_src @ W1[:F] + h_dst @ W1[F:]
    so the [E, 2F] concat never exists in HBM.  Matmul operands are bf16
    (MXU-native); accumulation, bias add and ReLU are f32.
    """
    hs = hs_ref[...]                                     # (TE, F)  bf16
    hd = hd_ref[...]                                     # (TE, F)  bf16

    h1 = jnp.dot(hs, w1s_ref[...], preferred_element_type=jnp.float32)
    h1 = h1 + jnp.dot(hd, w1d_ref[...], preferred_element_type=jnp.float32)
    h1 = jnp.maximum(h1 + b1_ref[...], 0.0).astype(jnp.bfloat16)

    h2 = jnp.dot(h1, w2_ref[...], preferred_element_type=jnp.float32)
    h2 = jnp.maximum(h2 + b2_ref[...], 0.0).astype(jnp.bfloat16)

    out = jnp.dot(h2, w3_ref[...], preferred_element_type=jnp.float32) + b3_ref[...]
    o_ref[...] = out.astype(o_ref.dtype)                 # (TE, C_pad) lane-dense store


def edge_mlp_pallas(hs, hd, w1, b1, w2, b2, w3, b3, *, tile_e=DEF_TILE_E,
                    out_dtype=jnp.float32):
    """[E, F] src feats + [E, F] dst feats -> [E, C] edge scores."""
    E, F = hs.shape
    Din, H = w1.shape
    assert Din == 2 * F, "W1 must have 2*F input features"
    C = w3.shape[1]

    # ---- lane-dense output: pad the class dimension up to a multiple of 128 --
    c_pad = ((C + LANE - 1) // LANE) * LANE
    w3p = jnp.pad(w3, ((0, 0), (0, c_pad - C)))
    b3p = jnp.pad(b3.reshape(1, -1), ((0, 0), (0, c_pad - C)))

    # ---- split W1 so the concat([h_src, h_dst]) is fused into two matmuls ----
    w1s, w1d = w1[:F], w1[F:]

    # ---- bf16 MXU operands (f32 accumulation inside the kernel), f32 biases --
    to_bf16 = lambda a: a.astype(jnp.bfloat16)
    hs, hd = to_bf16(hs), to_bf16(hd)
    w1s, w1d, w2b, w3p = to_bf16(w1s), to_bf16(w1d), to_bf16(w2), to_bf16(w3p)
    b1r = b1.reshape(1, -1).astype(jnp.float32)
    b2r = b2.reshape(1, -1).astype(jnp.float32)
    b3p = b3p.astype(jnp.float32)

    # ---- ragged edge count: pad E up to the tile; padded rows sliced off -----
    n_tiles = pl.cdiv(E, tile_e)
    e_pad = n_tiles * tile_e
    if e_pad != E:
        hs = jnp.pad(hs, ((0, e_pad - E), (0, 0)))
        hd = jnp.pad(hd, ((0, e_pad - E), (0, 0)))

    full = lambda i: (0, 0)   # weights / biases: same (only) block every step

    # ---- scheduling hints -----------------------------------------------------
    flops = 2 * E * (2 * F * H + H * H + H * C)
    bytes_accessed = int(
        2 * (hs.size + hd.size + w1s.size + w1d.size + w2b.size + w3p.size)  # bf16
        + 4 * (b1r.size + b2r.size + b3p.size)                               # f32
        + e_pad * c_pad * jnp.dtype(out_dtype).itemsize)                     # output
    cost = pl.CostEstimate(flops=flops, transcendentals=0,
                           bytes_accessed=bytes_accessed)

    # Rough VMEM footprint (double-buffered edge tiles + output, weights, live
    # activations); raise the scoped limit only when the 32 MiB default would
    # not fit.  TODO(synk): for very large F on v7x (64 MiB VMEM) also tile H.
    vmem_est = (2 * 2 * tile_e * F * 2                               # hs/hd tiles, 2-buf bf16
                + 2 * (2 * F * H + H * H + H * c_pad) * 2            # weights, 2-buf bf16
                + 2 * (2 * H + c_pad) * 4                            # biases, f32
                + 2 * tile_e * c_pad * jnp.dtype(out_dtype).itemsize # out tiles, 2-buf
                + 2 * tile_e * H * 4)                                # live h1/h2 f32
    cp_kwargs = dict(dimension_semantics=("parallel",))
    if vmem_est > 32 * 1024 * 1024:
        cp_kwargs["vmem_limit_bytes"] = int(min(vmem_est * 5 // 4, 128 * 1024 * 1024))

    out = pl.pallas_call(
        _edge_mlp_kernel,
        out_shape=jax.ShapeDtypeStruct((e_pad, c_pad), out_dtype),
        grid_spec=pltpu.PrefetchScalarGridSpec(
            num_scalar_prefetch=0,
            grid=(n_tiles,),
            in_specs=[
                pl.BlockSpec((tile_e, F), lambda i: (i, 0)),   # h_src tile
                pl.BlockSpec((tile_e, F), lambda i: (i, 0)),   # h_dst tile
                pl.BlockSpec((F, H), full),                    # W1 top half
                pl.BlockSpec((F, H), full),                    # W1 bottom half
                pl.BlockSpec((1, H), full),                    # b1
                pl.BlockSpec((H, H), full),                    # W2
                pl.BlockSpec((1, H), full),                    # b2
                pl.BlockSpec((H, c_pad), full),                # W3 (padded to 128 cols)
                pl.BlockSpec((1, c_pad), full),                # b3 (padded to 128 cols)
            ],
            out_specs=pl.BlockSpec((tile_e, c_pad), lambda i: (i, 0)),
        ),
        compiler_params=pltpu.CompilerParams(**cp_kwargs),
        cost_estimate=cost,
    )(hs, hd, w1s, w1d, b1r, w2b, b2r, w3p, b3p)

    return out[:E, :C]


def mlp_predictor_forward(src, dst, h, params, *, tile_e=DEF_TILE_E):
    """Equivalent of MLPPredictor.forward(graph, h).

    src, dst: int32 [E] edge endpoint node indices (the graph structure).
    h:        [N, F] node features.
    Returns:  [E, C] per-edge scores.
    """
    w1, b1, w2, b2, w3, b3 = params
    # apply_edges: gather endpoint features (XLA gather); the concat and the
    # full 3-layer MLP are fused inside the Pallas kernel.
    hs = jnp.take(h, src, axis=0)
    hd = jnp.take(h, dst, axis=0)
    return edge_mlp_pallas(hs, hd, w1, b1, w2, b2, w3, b3,
                           tile_e=tile_e, out_dtype=h.dtype)


def init_params(key, in_features, out_classes, dtype=jnp.float32):
    """Synthetic params matching MLP(3, 2*in_features, 4*in_features, out_classes)."""
    din = 2 * in_features
    hid = 4 * in_features
    k1, k2, k3, k4, k5, k6 = jax.random.split(key, 6)
    scale = 0.05
    w1 = scale * jax.random.normal(k1, (din, hid), dtype)
    b1 = scale * jax.random.normal(k2, (1, hid), dtype)
    w2 = scale * jax.random.normal(k3, (hid, hid), dtype)
    b2 = scale * jax.random.normal(k4, (1, hid), dtype)
    w3 = scale * jax.random.normal(k5, (hid, out_classes), dtype)
    b3 = scale * jax.random.normal(k6, (1, out_classes), dtype)
    return (w1, b1, w2, b2, w3, b3)


def _reference(src, dst, h, params):
    w1, b1, w2, b2, w3, b3 = params
    x = jnp.concatenate([h[src], h[dst]], axis=1)
    h1 = jnp.maximum(x @ w1 + b1, 0.0)
    h2 = jnp.maximum(h1 @ w2 + b2, 0.0)
    return h2 @ w3 + b3


if __name__ == "__main__":
    # Small shapes: 8 nodes, 16 edges, 16 node features, 4 output classes.
    N, E, F, C = 8, 16, 16, 4

    key = jax.random.PRNGKey(0)
    k_h, k_src, k_dst, k_p = jax.random.split(key, 4)

    h = jax.random.normal(k_h, (N, F), jnp.float32)
    src = jax.random.randint(k_src, (E,), 0, N, dtype=jnp.int32)
    dst = jax.random.randint(k_dst, (E,), 0, N, dtype=jnp.int32)
    params = init_params(k_p, F, C)

    fwd = jax.jit(functools.partial(mlp_predictor_forward))
    score = fwd(src, dst, h, params)
    score = jax.block_until_ready(score)

    ref = _reference(src, dst, h, params)
    assert score.shape == (E, C)
    # bf16 MXU operands (f32 accumulation) -> looser tolerance than pure f32.
    assert jnp.allclose(score, ref, atol=2e-2, rtol=2e-2), (
        float(jnp.max(jnp.abs(score - ref))))

    print("KERNEL_OK")
</pallas_src>

<mosaic_0001>
module attributes {stable_mosaic.version = 11 : i64} {
  func.func @_edge_mlp_kernel(%arg0: i32, %arg1: memref<256x16xbf16, #tpu.memory_space<vmem>>, %arg2: memref<256x16xbf16, #tpu.memory_space<vmem>>, %arg3: memref<16x64xbf16, #tpu.memory_space<vmem>>, %arg4: memref<16x64xbf16, #tpu.memory_space<vmem>>, %arg5: memref<1x64xf32, #tpu.memory_space<vmem>>, %arg6: memref<64x64xbf16, #tpu.memory_space<vmem>>, %arg7: memref<1x64xf32, #tpu.memory_space<vmem>>, %arg8: memref<64x128xbf16, #tpu.memory_space<vmem>>, %arg9: memref<1x128xf32, #tpu.memory_space<vmem>>, %arg10: memref<256x128xf32, #tpu.memory_space<vmem>>) attributes {dimension_semantics = [#tpu.dimension_semantics<parallel>], iteration_bounds = array<i64: 1>, scalar_prefetch = 0 : i64, scratch_operands = 0 : i64, tpu.core_type = #tpu.core_type<tc>, window_params = [{transform_indices = @transform_0, window_bounds = array<i64: 256, 16>}, {transform_indices = @transform_1, window_bounds = array<i64: 256, 16>}, {pipeline_mode = #tpu.pipeline_mode<synchronous>, transform_indices = @transform_2, window_bounds = array<i64: 16, 64>}, {pipeline_mode = #tpu.pipeline_mode<synchronous>, transform_indices = @transform_3, window_bounds = array<i64: 16, 64>}, {pipeline_mode = #tpu.pipeline_mode<synchronous>, transform_indices = @transform_4, window_bounds = array<i64: 1, 64>}, {pipeline_mode = #tpu.pipeline_mode<synchronous>, transform_indices = @transform_5, window_bounds = array<i64: 64, 64>}, {pipeline_mode = #tpu.pipeline_mode<synchronous>, transform_indices = @transform_6, window_bounds = array<i64: 1, 64>}, {pipeline_mode = #tpu.pipeline_mode<synchronous>, transform_indices = @transform_7, window_bounds = array<i64: 64, 128>}, {pipeline_mode = #tpu.pipeline_mode<synchronous>, transform_indices = @transform_8, window_bounds = array<i64: 1, 128>}, {transform_indices = @transform_9, window_bounds = array<i64: 256, 128>}]} {
    %c0 = arith.constant 0 : index
    %c0_0 = arith.constant 0 : index
    %0 = vector.load %arg1[%c0, %c0_0] : memref<256x16xbf16, #tpu.memory_space<vmem>>, vector<256x16xbf16>
    %c0_1 = arith.constant 0 : index
    %c0_2 = arith.constant 0 : index
    %1 = vector.load %arg2[%c0_1, %c0_2] : memref<256x16xbf16, #tpu.memory_space<vmem>>, vector<256x16xbf16>
    %c0_3 = arith.constant 0 : index
    %c0_4 = arith.constant 0 : index
    %2 = vector.load %arg3[%c0_3, %c0_4] : memref<16x64xbf16, #tpu.memory_space<vmem>>, vector<16x64xbf16>
    %cst = arith.constant dense<0.000000e+00> : vector<256x64xf32>
    %3 = tpu.matmul %0, %2, %cst {dimension_numbers = #tpu.dot_dimension_numbers<[1], [0], [0], [1], [0, 0, 1, 1], [], []>} : vector<256x16xbf16>, vector<16x64xbf16>, vector<256x64xf32> -> vector<256x64xf32>
    %c0_5 = arith.constant 0 : index
    %c0_6 = arith.constant 0 : index
    %4 = vector.load %arg4[%c0_5, %c0_6] : memref<16x64xbf16, #tpu.memory_space<vmem>>, vector<16x64xbf16>
    %cst_7 = arith.constant dense<0.000000e+00> : vector<256x64xf32>
    %5 = tpu.matmul %1, %4, %cst_7 {dimension_numbers = #tpu.dot_dimension_numbers<[1], [0], [0], [1], [0, 0, 1, 1], [], []>} : vector<256x16xbf16>, vector<16x64xbf16>, vector<256x64xf32> -> vector<256x64xf32>
    %6 = arith.addf %3, %5 : vector<256x64xf32>
    %c0_8 = arith.constant 0 : index
    %c0_9 = arith.constant 0 : index
    %7 = vector.load %arg5[%c0_8, %c0_9] : memref<1x64xf32, #tpu.memory_space<vmem>>, vector<1x64xf32>
    %8 = vector.broadcast %7 : vector<1x64xf32> to vector<256x64xf32>
    %9 = arith.addf %6, %8 : vector<256x64xf32>
    %cst_10 = arith.constant 0.000000e+00 : f32
    %10 = vector.broadcast %cst_10 : f32 to vector<256x64xf32>
    %11 = arith.maximumf %9, %10 : vector<256x64xf32>
    %12 = arith.truncf %11 : vector<256x64xf32> to vector<256x64xbf16>
    %c0_11 = arith.constant 0 : index
    %c0_12 = arith.constant 0 : index
    %13 = vector.load %arg6[%c0_11, %c0_12] : memref<64x64xbf16, #tpu.memory_space<vmem>>, vector<64x64xbf16>
    %cst_13 = arith.constant dense<0.000000e+00> : vector<256x64xf32>
    %14 = tpu.matmul %12, %13, %cst_13 {dimension_numbers = #tpu.dot_dimension_numbers<[1], [0], [0], [1], [0, 0, 1, 1], [], []>} : vector<256x64xbf16>, vector<64x64xbf16>, vector<256x64xf32> -> vector<256x64xf32>
    %c0_14 = arith.constant 0 : index
    %c0_15 = arith.constant 0 : index
    %15 = vector.load %arg7[%c0_14, %c0_15] : memref<1x64xf32, #tpu.memory_space<vmem>>, vector<1x64xf32>
    %16 = vector.broadcast %15 : vector<1x64xf32> to vector<256x64xf32>
    %17 = arith.addf %14, %16 : vector<256x64xf32>
    %cst_16 = arith.constant 0.000000e+00 : f32
    %18 = vector.broadcast %cst_16 : f32 to vector<256x64xf32>
    %19 = arith.maximumf %17, %18 : vector<256x64xf32>
    %20 = arith.truncf %19 : vector<256x64xf32> to vector<256x64xbf16>
    %c0_17 = arith.constant 0 : index
    %c0_18 = arith.constant 0 : index
    %21 = vector.load %arg8[%c0_17, %c0_18] : memref<64x128xbf16, #tpu.memory_space<vmem>>, vector<64x128xbf16>
    %cst_19 = arith.constant dense<0.000000e+00> : vector<256x128xf32>
    %22 = tpu.matmul %20, %21, %cst_19 {dimension_numbers = #tpu.dot_dimension_numbers<[1], [0], [0], [1], [0, 0, 1, 1], [], []>} : vector<256x64xbf16>, vector<64x128xbf16>, vector<256x128xf32> -> vector<256x128xf32>
    %c0_20 = arith.constant 0 : index
    %c0_21 = arith.constant 0 : index
    %23 = vector.load %arg9[%c0_20, %c0_21] : memref<1x128xf32, #tpu.memory_space<vmem>>, vector<1x128xf32>
    %24 = vector.broadcast %23 : vector<1x128xf32> to vector<256x128xf32>
    %25 = arith.addf %22, %24 : vector<256x128xf32>
    %c0_22 = arith.constant 0 : index
    %c0_23 = arith.constant 0 : index
    %26 = vector.load %arg10[%c0_22, %c0_23] : memref<256x128xf32, #tpu.memory_space<vmem>>, vector<256x128xf32>
    tpu.vector_store %arg10[%c0_22, %c0_23], %25 {strides = array<i32>} : memref<256x128xf32, #tpu.memory_space<vmem>>, vector<256x128xf32>,
    return
  }
  func.func @transform_0(%arg0: i32) -> (i32, i32) {
    %c0_i32 = arith.constant 0 : i32
    %c0_i32_0 = arith.constant 0 : i32
    return %arg0, %c0_i32 : i32, i32
  }
  func.func @transform_1(%arg0: i32) -> (i32, i32) {
    %c0_i32 = arith.constant 0 : i32
    %c0_i32_0 = arith.constant 0 : i32
    return %arg0, %c0_i32 : i32, i32
  }
  func.func @transform_2(%arg0: i32) -> (i32, i32) {
    %c0_i32 = arith.constant 0 : i32
    %c0_i32_0 = arith.constant 0 : i32
    %c0_i32_1 = arith.constant 0 : i32
    return %c0_i32, %c0_i32_0 : i32, i32
  }
  func.func @transform_3(%arg0: i32) -> (i32, i32) {
    %c0_i32 = arith.constant 0 : i32
    %c0_i32_0 = arith.constant 0 : i32
    %c0_i32_1 = arith.constant 0 : i32
    return %c0_i32, %c0_i32_0 : i32, i32
  }
  func.func @transform_4(%arg0: i32) -> (i32, i32) {
    %c0_i32 = arith.constant 0 : i32
    %c0_i32_0 = arith.constant 0 : i32
    %c0_i32_1 = arith.constant 0 : i32
    return %c0_i32, %c0_i32_0 : i32, i32
  }
  func.func @transform_5(%arg0: i32) -> (i32, i32) {
    %c0_i32 = arith.constant 0 : i32
    %c0_i32_0 = arith.constant 0 : i32
    %c0_i32_1 = arith.constant 0 : i32
    return %c0_i32, %c0_i32_0 : i32, i32
  }
  func.func @transform_6(%arg0: i32) -> (i32, i32) {
    %c0_i32 = arith.constant 0 : i32
    %c0_i32_0 = arith.constant 0 : i32
    %c0_i32_1 = arith.constant 0 : i32
    return %c0_i32, %c0_i32_0 : i32, i32
  }
  func.func @transform_7(%arg0: i32) -> (i32, i32) {
    %c0_i32 = arith.constant 0 : i32
    %c0_i32_0 = arith.constant 0 : i32
    %c0_i32_1 = arith.constant 0 : i32
    return %c0_i32, %c0_i32_0 : i32, i32
  }
  func.func @transform_8(%arg0: i32) -> (i32, i32) {
    %c0_i32 = arith.constant 0 : i32
    %c0_i32_0 = arith.constant 0 : i32
    %c0_i32_1 = arith.constant 0 : i32
    return %c0_i32, %c0_i32_0 : i32, i32
  }
  func.func @transform_9(%arg0: i32) -> (i32, i32) {
    %c0_i32 = arith.constant 0 : i32
    %c0_i32_0 = arith.constant 0 : i32
    return %arg0, %c0_i32 : i32, i32
  }
}

</mosaic_0001>

<bundles_post_ra>
// kernel: mlp_predictor_forward.1
= control target key start
LH: loop header
LB: loop body
LE: loop exit
PB: predicated region body
PF: predicated region fallthrough
CT: control target
= control target key end

     0   :  { %vm187_vm0 = vcmask 130048   ;;  %vm818_vm1 = vcmask 523264   ;;  %s2212_s3 = inlined_call_operand.vmem [shape: bf16[16,64], index: 3, kind: input, shape index: {}]   ;;  %s2213_s1 = inlined_call_operand.vmem [shape: bf16[256,16], index: 1, kind: input, shape index: {}]   ;;  %s2214_s2 = inlined_call_operand.vmem [shape: bf16[16,64], index: 2, kind: input, shape index: {}]   ;;  %s2215_s0 = inlined_call_operand.vmem [shape: bf16[256,16], index: 0, kind: input, shape index: {}]   ;;  %s2216_s5 = inlined_call_operand.vmem [shape: bf16[64,64], index: 5, kind: input, shape index: {}]   ;;  %s2217_s7 = inlined_call_operand.vmem [shape: bf16[64,128], index: 7, kind: input, shape index: {}]   ;;  %s2218_s4 = inlined_call_operand.vmem [shape: f32[1,64], index: 4, kind: input, shape index: {}]   ;;  %s2219_s6 = inlined_call_operand.vmem [shape: f32[1,64], index: 6, kind: input, shape index: {}]   ;;  %s2220_s8 = inlined_call_operand.vmem [shape: f32[1,128], index: 8, kind: input, shape index: {}]   ;;  %s2221_s9 = inlined_call_operand.vmem [shape: f32[256,128], index: 9, kind: output, shape index: {}]  }
   0x1   :  { %v1723_v0 = vld [vmem:[%s2212_s3] sm:$0xff]   ;;  %v1725_v2 = vld [vmem:[%s2213_s1 + $0x8] sm:$0xff]   ;;  %v1727_v4 = vld [vmem:[%s2213_s1 + $0x10] sm:$0xff]  }
   0x2   :  { %v1724_v1 = vld [vmem:[%s2213_s1] sm:$0xff]   ;;  %1543 = vmatprep.subr.bf16.mxu0 %v1723_v0  ;;  %v1728_v5 = vld [vmem:[%s2213_s1 + $0x18] sm:$0xff]   ;;  %v1730_v7 = vld [vmem:[%s2213_s1 + $0x28] sm:$0xff]  }
   0x3   :  { %1544 = vmatpush3.bf16.msra.mxu0 %v1723_v0  ;;  %1545 = vmatprep.mubr.msk.bf16.mxu0 %vm187_vm0, %v1724_v1  ;;  %v1726_v3 = vld [vmem:[%s2214_s2] sm:$0xff]   ;;  %v1731_v8 = vld [vmem:[%s2213_s1 + $0x30] sm:$0xff]   ;;  %v1732_v9 = vld [vmem:[%s2213_s1 + $0x38] sm:$0xff]  }
   0x4   :  { %1577 = vmatprep.subr.bf16.mxu0 %v1726_v3  ;;  %v1729_v6 = vld [vmem:[%s2213_s1 + $0x20] sm:$0xff]   ;;  %v1734_v11 = vld [vmem:[%s2213_s1 + $0x48] sm:$0xff]   ;;  %v1735_v12 = vld [vmem:[%s2213_s1 + $0x50] sm:$0xff]  }
   0x5   :  { %v1733_v10 = vld [vmem:[%s2213_s1 + $0x40] sm:$0xff]   ;;  %v1758_v14 = vld [vmem:[%s2216_s5 + $0x8] sm:$0xff]   ;;  %v1736_v15 = vld [vmem:[%s2213_s1 + $0x58] sm:$0xff]  }
   0x6   :  { %1546 = vmatmul.mubr.msk.bf16.vlgmr.msra.gmra.mrb[0].mxu0 %vm187_vm0, %v1725_v2  ;;  %v1757_v13 = vld [vmem:[%s2216_s5] sm:$0xff]   ;;  %v1738_v17 = vld [vmem:[%s2213_s1 + $0x68] sm:$0xff]   ;;  %v1739_v18 = vld [vmem:[%s2213_s1 + $0x70] sm:$0xff]  }
   0x7   :  { %1578 = vmatpush3.bf16.msra.mxu0 %v1726_v3  ;;  %1549 = vmatprep.mubr.msk.bf16.mxu0 %vm187_vm0, %v1727_v4  ;;  %v1737_v16 = vld [vmem:[%s2213_s1 + $0x60] sm:$0xff]   ;;  %v1740_v19 = vld [vmem:[%s2213_s1 + $0x78] sm:$0xff]   ;;  %v1742_v21 = vld [vmem:[%s2215_s0 + $0x8] sm:$0xff]  }
   0x8   :  { %1611 = vmatprep.subr.bf16.mxu1 %v1757_v13  ;;  %v1741_v20 = vld [vmem:[%s2215_s0] sm:$0xff]   ;;  %v1743_v22 = vld [vmem:[%s2215_s0 + $0x10] sm:$0xff]   ;;  %v1744_v23 = vld [vmem:[%s2215_s0 + $0x18] sm:$0xff]  }
   0x9   :  { %1612 = vmatpush3.bf16.msra.mxu1 %v1757_v13  ;;  %v1745_v24 = vld [vmem:[%s2215_s0 + $0x20] sm:$0xff]   ;;  %v1746_v25 = vld [vmem:[%s2215_s0 + $0x28] sm:$0xff]   ;;  %v1747_v26 = vld [vmem:[%s2215_s0 + $0x30] sm:$0xff]  }
   0xa   :  { %1613 = vmatprep.subr.bf16.mxu1 %v1758_v14  ;;  %v1748_v27 = vld [vmem:[%s2215_s0 + $0x38] sm:$0xff]   ;;  %v1749_v28 = vld [vmem:[%s2215_s0 + $0x40] sm:$0xff]   ;;  %v1750_v29 = vld [vmem:[%s2215_s0 + $0x48] sm:$0xff]  }
   0xb   :  { %v1751_v30 = vld [vmem:[%s2215_s0 + $0x50] sm:$0xff]   ;;  %v1752_v31 = vld [vmem:[%s2215_s0 + $0x58] sm:$0xff]   ;;  %v1753_v32 = vld [vmem:[%s2215_s0 + $0x60] sm:$0xff]  }
   0xc   :  { %v1754_v33 = vld [vmem:[%s2215_s0 + $0x68] sm:$0xff]   ;;  %v1755_v34 = vld [vmem:[%s2215_s0 + $0x70] sm:$0xff]   ;;  %v1756_v35 = vld [vmem:[%s2215_s0 + $0x78] sm:$0xff]  }
   0xd   :  { %1614 = vmatpush3.bf16.msra.mxu1 %v1758_v14  ;;  %v1759_v36 = vld [vmem:[%s2216_s5 + $0x10] sm:$0xff]   ;;  %v1760_v37 = vld [vmem:[%s2216_s5 + $0x18] sm:$0xff]   ;;  %v1761_v38 = vld [vmem:[%s2217_s7] sm:$0xff]  }
   0xe   :  { %1550 = vmatmul.mubr.msk.bf16.gmra.mrb[4].mxu0 %vm187_vm0, %v1728_v5  ;;  %1615 = vmatprep.subr.bf16.mxu1 %v1759_v36  ;;  %v1967_v39 = vld [vmem:[%s2218_s4] ss:$0 sm:$0xff]  ;;  %v1762_v57 = vld [vmem:[%s2217_s7 + $0x8] sm:$0xff]   ;;  %v1763_v1 = vld [vmem:[%s2217_s7 + $0x10] sm:$0xff]  }
   0xf   :  { %1553 = vmatprep.mubr.msk.bf16.mxu0 %vm187_vm0, %v1729_v6 }
  0x11   :  { %1616 = vmatpush3.bf16.msra.mxu1 %v1759_v36 }
  0x12   :  { %1617 = vmatprep.subr.bf16.mxu1 %v1760_v37 }
  0x15   :  { %1618 = vmatpush3.bf16.msra.mxu1 %v1760_v37 }
  0x16   :  { %1554 = vmatmul.mubr.msk.bf16.gmra.mrb[8].mxu0 %vm187_vm0, %v1730_v7  ;;  %1651 = vmatprep.subr.bf16.mxu1 %v1761_v38 }
  0x17   :  { %1557 = vmatprep.mubr.msk.bf16.mxu0 %vm187_vm0, %v1731_v8 }
  0x1e   :  { %1558 = vmatmul.mubr.msk.bf16.gmra.mrb[12].mxu0 %vm187_vm0, %v1732_v9  ;;  %v1764_v9 = vld [vmem:[%s2217_s7 + $0x18] sm:$0xff]  }
  0x1f   :  { %1561 = vmatprep.mubr.msk.bf16.mxu0 %vm187_vm0, %v1733_v10 }
  0x26   :  { %1562 = vmatmul.mubr.msk.bf16.gmra.mrb[16].mxu0 %vm187_vm0, %v1734_v11 }
  0x27   :  { %1565 = vmatprep.mubr.msk.bf16.mxu0 %vm187_vm0, %v1735_v12 }
  0x2e   :  { %1566 = vmatmul.mubr.msk.bf16.gmra.mrb[20].mxu0 %vm187_vm0, %v1736_v15 }
  0x2f   :  { %1569 = vmatprep.mubr.msk.bf16.mxu0 %vm187_vm0, %v1737_v16 }
  0x36   :  { %1570 = vmatmul.mubr.msk.bf16.gmra.mrb[24].mxu0 %vm187_vm0, %v1738_v17 }
  0x37   :  { %1573 = vmatprep.mubr.msk.bf16.mxu0 %vm187_vm0, %v1739_v18 }
  0x3e   :  { %1574 = vmatmul.mubr.msk.bf16.gmra.mrb[28].mxu0 %vm187_vm0, %v1740_v19 }
  0x3f   :  { %1579 = vmatprep.mubr.msk.bf16.mxu0 %vm187_vm0, %v1741_v20 }
  0x46   :  { %1580 = vmatmul.mubr.msk.bf16.vlgmr.msra.gmra.mrb[0].mxu0 %vm187_vm0, %v1742_v21 }
  0x47   :  { %1583 = vmatprep.mubr.msk.bf16.mxu0 %vm187_vm0, %v1743_v22 }
  0x4e   :  { %1584 = vmatmul.mubr.msk.bf16.gmra.mrb[4].mxu0 %vm187_vm0, %v1744_v23 }
  0x4f   :  { %1587 = vmatprep.mubr.msk.bf16.mxu0 %vm187_vm0, %v1745_v24 }
  0x56   :  { %1588 = vmatmul.mubr.msk.bf16.gmra.mrb[8].mxu0 %vm187_vm0, %v1746_v25 }
  0x57   :  { %1591 = vmatprep.mubr.msk.bf16.mxu0 %vm187_vm0, %v1747_v26 }
  0x5e   :  { %1592 = vmatmul.mubr.msk.bf16.gmra.mrb[12].mxu0 %vm187_vm0, %v1748_v27 }
  0x5f   :  { %1595 = vmatprep.mubr.msk.bf16.mxu0 %vm187_vm0, %v1749_v28 }
  0x66   :  { %1596 = vmatmul.mubr.msk.bf16.gmra.mrb[16].mxu0 %vm187_vm0, %v1750_v29 }
  0x67   :  { %1599 = vmatprep.mubr.msk.bf16.mxu0 %vm187_vm0, %v1751_v30 }
  0x6e   :  { %1600 = vmatmul.mubr.msk.bf16.gmra.mrb[20].mxu0 %vm187_vm0, %v1752_v31 }
  0x6f   :  { %1603 = vmatprep.mubr.msk.bf16.mxu0 %vm187_vm0, %v1753_v32 }
  0x76   :  { %1604 = vmatmul.mubr.msk.bf16.gmra.mrb[24].mxu0 %vm187_vm0, %v1754_v33 }
  0x77   :  { %1607 = vmatprep.mubr.msk.bf16.mxu0 %vm187_vm0, %v1755_v34 }
  0x7e   :  { %1608 = vmatmul.mubr.msk.bf16.gmra.mrb[28].mxu0 %vm187_vm0, %v1756_v35 }
 0x119   :  { %v1581_v40 = vpop.f32.mrb[0].mxu0 }
 0x11a   :  { %v701_v41 = vadd.f32 %v1581_v40, %v1967_v39  ;;  %v565_v42 = vpop.f32.mrb[1].mxu0 }
 0x11b   :  { %v699_v43 = vadd.f32 %v1967_v39, %v565_v42  ;;  %v1582_v44 = vpop.f32.mrb[2].mxu0 }
 0x11c   :  { %v702_v45 = vadd.f32 %v1582_v44, %v1967_v39  ;;  %v568_v46 = vpop.f32.mrb[3].mxu0  ;;  %v733_v48 = vmax.f32 %v701_v41, 0.0 }
 0x11d   :  { %v700_v47 = vadd.f32 %v1967_v39, %v568_v46  ;;  %v731_v50 = vmax.f32 %v699_v43, 0.0 }
 0x11e   :  { %v734_v49 = vmax.f32 %v702_v45, 0.0 }
 0x11f   :  { %v732_v51 = vmax.f32 %v700_v47, 0.0 }
 0x120   :  { %v764_v52 = vpack.c.bf16 %v734_v49, %v733_v48 }
 0x121   :  { %v1585_v53 = vpop.f32.mrb[4].mxu0  ;;  %v763_v54 = vpack.c.bf16 %v732_v51, %v731_v50 }
 0x122   :  { %v705_v55 = vadd.f32 %v1585_v53, %v1967_v39  ;;  %v581_v56 = vpop.f32.mrb[5].mxu0 }
 0x123   :  { %v703_v58 = vadd.f32 %v1967_v39, %v581_v56  ;;  %v1586_v59 = vpop.f32.mrb[6].mxu0  ;;  %1619 = vmatprep.mubr.msk.bf16.mxu1 %vm818_vm1, %v763_v54 }
 0x124   :  { %v706_v60 = vadd.f32 %v1586_v59, %v1967_v39  ;;  %v584_v61 = vpop.f32.mrb[7].mxu0  ;;  %1620 = vmatmul.mubr.msk.bf16.vlgmr.msra.gmra.mrb[0].mxu1 %vm818_vm1, %v764_v52  ;;  %v737_v63 = vmax.f32 %v705_v55, 0.0 }
 0x125   :  { %v704_v62 = vadd.f32 %v1967_v39, %v584_v61  ;;  %1652 = vmatpush3.bf16.msra.mxu1 %v1761_v38  ;;  %v735_v2 = vmax.f32 %v703_v58, 0.0 }
 0x126   :  { %v738_v0 = vmax.f32 %v706_v60, 0.0  ;;  %1653 = vmatprep.subr.bf16.mxu1 %v1762_v57 }
 0x127   :  { %v736_v3 = vmax.f32 %v704_v62, 0.0 }
 0x128   :  { %v766_v4 = vpack.c.bf16 %v738_v0, %v737_v63 }
 0x129   :  { %v765_v5 = vpack.c.bf16 %v736_v3, %v735_v2  ;;  %v1589_v6 = vpop.f32.mrb[8].mxu0  ;;  %1654 = vmatpush3.bf16.msra.mxu1 %v1762_v57 }
 0x12a   :  { %v709_v7 = vadd.f32 %v1589_v6, %v1967_v39  ;;  %v597_v8 = vpop.f32.mrb[9].mxu0  ;;  %1655 = vmatprep.subr.bf16.mxu1 %v1763_v1 }
 0x12b   :  { %v707_v10 = vadd.f32 %v1967_v39, %v597_v8  ;;  %v1590_v11 = vpop.f32.mrb[10].mxu0  ;;  %1623 = vmatprep.mubr.msk.bf16.mxu1 %vm818_vm1, %v765_v5 }
 0x12c   :  { %v710_v12 = vadd.f32 %v1590_v11, %v1967_v39  ;;  %v600_v13 = vpop.f32.mrb[11].mxu0  ;;  %1624 = vmatmul.mubr.msk.bf16.gmra.mrb[4].mxu1 %vm818_vm1, %v766_v4  ;;  %v741_v15 = vmax.f32 %v709_v7, 0.0 }
 0x12d   :  { %v708_v14 = vadd.f32 %v1967_v39, %v600_v13  ;;  %1656 = vmatpush3.bf16.msra.mxu1 %v1763_v1  ;;  %v739_v17 = vmax.f32 %v707_v10, 0.0 }
 0x12e   :  { %v742_v16 = vmax.f32 %v710_v12, 0.0  ;;  %1657 = vmatprep.subr.bf16.mxu1 %v1764_v9 }
 0x12f   :  { %v740_v18 = vmax.f32 %v708_v14, 0.0 }
 0x130   :  { %v768_v19 = vpack.c.bf16 %v742_v16, %v741_v15 }
 0x131   :  { %v767_v20 = vpack.c.bf16 %v740_v18, %v739_v17  ;;  %v1593_v21 = vpop.f32.mrb[12].mxu0  ;;  %1658 = vmatpush3.bf16.msra.mxu1 %v1764_v9 }
 0x132   :  { %v713_v22 = vadd.f32 %v1593_v21, %v1967_v39  ;;  %v613_v23 = vpop.f32.mrb[13].mxu0 }
 0x133   :  { %v711_v24 = vadd.f32 %v1967_v39, %v613_v23  ;;  %v1594_v25 = vpop.f32.mrb[14].mxu0  ;;  %1627 = vmatprep.mubr.msk.bf16.mxu1 %vm818_vm1, %v767_v20 }
 0x134   :  { %v714_v26 = vadd.f32 %v1594_v25, %v1967_v39  ;;  %v616_v27 = vpop.f32.mrb[15].mxu0  ;;  %1628 = vmatmul.mubr.msk.bf16.gmra.mrb[8].mxu1 %vm818_vm1, %v768_v19  ;;  %v745_v29 = vmax.f32 %v713_v22, 0.0 }
 0x135   :  { %v712_v28 = vadd.f32 %v1967_v39, %v616_v27  ;;  %v743_v31 = vmax.f32 %v711_v24, 0.0 }
 0x136   :  { %v746_v30 = vmax.f32 %v714_v26, 0.0 }
 0x137   :  { %v744_v32 = vmax.f32 %v712_v28, 0.0  ;;  %v2029_v28 = vld [vmem:[%s2219_s6] ss:$0 sm:$0xff] }
 0x138   :  { %v770_v33 = vpack.c.bf16 %v746_v30, %v745_v29 }
 0x139   :  { %v769_v34 = vpack.c.bf16 %v744_v32, %v743_v31  ;;  %v1597_v35 = vpop.f32.mrb[16].mxu0 }
 0x13a   :  { %v717_v36 = vadd.f32 %v1597_v35, %v1967_v39  ;;  %v629_v37 = vpop.f32.mrb[17].mxu0 }
 0x13b   :  { %v715_v38 = vadd.f32 %v1967_v39, %v629_v37  ;;  %v1598_v40 = vpop.f32.mrb[18].mxu0  ;;  %1631 = vmatprep.mubr.msk.bf16.mxu1 %vm818_vm1, %v769_v34 }
 0x13c   :  { %v718_v41 = vadd.f32 %v1598_v40, %v1967_v39  ;;  %v632_v42 = vpop.f32.mrb[19].mxu0  ;;  %1632 = vmatmul.mubr.msk.bf16.gmra.mrb[12].mxu1 %vm818_vm1, %v770_v33  ;;  %v749_v44 = vmax.f32 %v717_v36, 0.0 }
 0x13d   :  { %v716_v43 = vadd.f32 %v1967_v39, %v632_v42  ;;  %v747_v46 = vmax.f32 %v715_v38, 0.0 }
 0x13e   :  { %v750_v45 = vmax.f32 %v718_v41, 0.0 }
 0x13f   :  { %v748_v47 = vmax.f32 %v716_v43, 0.0 }
 0x140   :  { %v772_v48 = vpack.c.bf16 %v750_v45, %v749_v44 }
 0x141   :  { %v771_v49 = vpack.c.bf16 %v748_v47, %v747_v46  ;;  %v1601_v50 = vpop.f32.mrb[20].mxu0 }
 0x142   :  { %v721_v51 = vadd.f32 %v1601_v50, %v1967_v39  ;;  %v645_v52 = vpop.f32.mrb[21].mxu0 }
 0x143   :  { %v719_v53 = vadd.f32 %v1967_v39, %v645_v52  ;;  %v1602_v54 = vpop.f32.mrb[22].mxu0  ;;  %1635 = vmatprep.mubr.msk.bf16.mxu1 %vm818_vm1, %v771_v49 }
 0x144   :  { %v722_v55 = vadd.f32 %v1602_v54, %v1967_v39  ;;  %v648_v56 = vpop.f32.mrb[23].mxu0  ;;  %1636 = vmatmul.mubr.msk.bf16.gmra.mrb[16].mxu1 %vm818_vm1, %v772_v48  ;;  %v753_v58 = vmax.f32 %v721_v51, 0.0 }
 0x145   :  { %v720_v57 = vadd.f32 %v1967_v39, %v648_v56  ;;  %v751_v60 = vmax.f32 %v719_v53, 0.0 }
 0x146   :  { %v754_v59 = vmax.f32 %v722_v55, 0.0 }
 0x147   :  { %v752_v61 = vmax.f32 %v720_v57, 0.0 }
 0x148   :  { %v774_v62 = vpack.c.bf16 %v754_v59, %v753_v58 }
 0x149   :  { %v773_v63 = vpack.c.bf16 %v752_v61, %v751_v60  ;;  %v1605_v0 = vpop.f32.mrb[24].mxu0 }
 0x14a   :  { %v725_v1 = vadd.f32 %v1605_v0, %v1967_v39  ;;  %v661_v2 = vpop.f32.mrb[25].mxu0 }
 0x14b   :  { %v723_v3 = vadd.f32 %v1967_v39, %v661_v2  ;;  %v1606_v4 = vpop.f32.mrb[26].mxu0  ;;  %1639 = vmatprep.mubr.msk.bf16.mxu1 %vm818_vm1, %v773_v63 }
 0x14c   :  { %v726_v5 = vadd.f32 %v1606_v4, %v1967_v39  ;;  %v664_v6 = vpop.f32.mrb[27].mxu0  ;;  %1640 = vmatmul.mubr.msk.bf16.gmra.mrb[20].mxu1 %vm818_vm1, %v774_v62  ;;  %v757_v8 = vmax.f32 %v725_v1, 0.0 }
 0x14d   :  { %v724_v7 = vadd.f32 %v1967_v39, %v664_v6  ;;  %v755_v10 = vmax.f32 %v723_v3, 0.0 }
 0x14e   :  { %v758_v9 = vmax.f32 %v726_v5, 0.0 }
 0x14f   :  { %v756_v11 = vmax.f32 %v724_v7, 0.0 }
 0x150   :  { %v776_v12 = vpack.c.bf16 %v758_v9, %v757_v8 }
 0x151   :  { %v775_v13 = vpack.c.bf16 %v756_v11, %v755_v10  ;;  %v1609_v14 = vpop.f32.mrb[28].mxu0 }
 0x152   :  { %v729_v15 = vadd.f32 %v1609_v14, %v1967_v39  ;;  %v677_v16 = vpop.f32.mrb[29].mxu0 }
 0x153   :  { %v727_v17 = vadd.f32 %v1967_v39, %v677_v16  ;;  %v1610_v18 = vpop.f32.mrb[30].mxu0  ;;  %1643 = vmatprep.mubr.msk.bf16.mxu1 %vm818_vm1, %v775_v13 }
 0x154   :  { %v730_v19 = vadd.f32 %v1610_v18, %v1967_v39  ;;  %v680_v20 = vpop.f32.mrb[31].mxu0  ;;  %1644 = vmatmul.mubr.msk.bf16.gmra.mrb[24].mxu1 %vm818_vm1, %v776_v12  ;;  %v761_v22 = vmax.f32 %v729_v15, 0.0 }
 0x155   :  { %v728_v21 = vadd.f32 %v1967_v39, %v680_v20  ;;  %v759_v24 = vmax.f32 %v727_v17, 0.0 }
 0x156   :  { %v762_v23 = vmax.f32 %v730_v19, 0.0 }
 0x157   :  { %v760_v25 = vmax.f32 %v728_v21, 0.0 }
 0x158   :  { %v778_v26 = vpack.c.bf16 %v762_v23, %v761_v22 }
 0x159   :  { %v777_v27 = vpack.c.bf16 %v760_v25, %v759_v24 }
 0x15b   :  { %1647 = vmatprep.mubr.msk.bf16.mxu1 %vm818_vm1, %v777_v27 }
 0x15c   :  { %1648 = vmatmul.mubr.msk.bf16.gmra.mrb[28].mxu1 %vm818_vm1, %v778_v26 }
 0x1f7   :  { %v1621_v29 = vpop.f32.mrb[0].mxu1 }
 0x1f8   :  { %v910_v30 = vadd.f32 %v1621_v29, %v2029_v28  ;;  %v901_v31 = vpop.f32.mrb[1].mxu1 }
 0x1f9   :  { %v902_v39 = vadd.f32 %v2029_v28, %v901_v31  ;;  %v1622_v32 = vpop.f32.mrb[2].mxu1 }
 0x1fa   :  { %v913_v33 = vadd.f32 %v1622_v32, %v2029_v28  ;;  %v904_v34 = vpop.f32.mrb[3].mxu1  ;;  %v1030_v36 = vmax.f32 %v910_v30, 0.0 }
 0x1fb   :  { %v905_v35 = vadd.f32 %v2029_v28, %v904_v34  ;;  %v1028_v38 = vmax.f32 %v902_v39, 0.0 }
 0x1fc   :  { %v1031_v37 = vmax.f32 %v913_v33, 0.0 }
 0x1fd   :  { %v1029_v40 = vmax.f32 %v905_v35, 0.0 }
 0x1fe   :  { %v1061_v41 = vpack.c.bf16 %v1031_v37, %v1030_v36 }
 0x1ff   :  { %v1060_v42 = vpack.c.bf16 %v1029_v40, %v1028_v38  ;;  %v1625_v43 = vpop.f32.mrb[4].mxu1 }
 0x200   :  { %v926_v44 = vadd.f32 %v1625_v43, %v2029_v28  ;;  %v917_v45 = vpop.f32.mrb[5].mxu1 }
 0x201   :  { %v918_v46 = vadd.f32 %v2029_v28, %v917_v45  ;;  %v1626_v47 = vpop.f32.mrb[6].mxu1  ;;  %1659 = vmatprep.mubr.msk.bf16.mxu1 %vm818_vm1, %v1060_v42 }
 0x202   :  { %v929_v48 = vadd.f32 %v1626_v47, %v2029_v28  ;;  %v920_v49 = vpop.f32.mrb[7].mxu1  ;;  %1660 = vmatmul.mubr.msk.bf16.vlgmr.msra.gmra.mrb[32].mxu1 %vm818_vm1, %v1061_v41  ;;  %v1034_v51 = vmax.f32 %v926_v44, 0.0 }
 0x203   :  { %v921_v50 = vadd.f32 %v2029_v28, %v920_v49  ;;  %v1032_v53 = vmax.f32 %v918_v46, 0.0 }
 0x204   :  { %v1035_v52 = vmax.f32 %v929_v48, 0.0 }
 0x205   :  { %v1033_v54 = vmax.f32 %v921_v50, 0.0 }
 0x206   :  { %v1063_v55 = vpack.c.bf16 %v1035_v52, %v1034_v51 }
 0x207   :  { %v1062_v56 = vpack.c.bf16 %v1033_v54, %v1032_v53  ;;  %v1629_v57 = vpop.f32.mrb[8].mxu1 }
 0x208   :  { %v942_v58 = vadd.f32 %v1629_v57, %v2029_v28  ;;  %v933_v59 = vpop.f32.mrb[9].mxu1 }
 0x209   :  { %v934_v60 = vadd.f32 %v2029_v28, %v933_v59  ;;  %v1630_v61 = vpop.f32.mrb[10].mxu1  ;;  %1663 = vmatprep.mubr.msk.bf16.mxu1 %vm818_vm1, %v1062_v56 }
 0x20a   :  { %v945_v62 = vadd.f32 %v1630_v61, %v2029_v28  ;;  %v936_v63 = vpop.f32.mrb[11].mxu1  ;;  %1664 = vmatmul.mubr.msk.bf16.gmra.mrb[36].mxu1 %vm818_vm1, %v1063_v55  ;;  %v1038_v1 = vmax.f32 %v942_v58, 0.0 }
 0x20b   :  { %v937_v0 = vadd.f32 %v2029_v28, %v936_v63  ;;  %v1036_v3 = vmax.f32 %v934_v60, 0.0 }
 0x20c   :  { %v1039_v2 = vmax.f32 %v945_v62, 0.0 }
 0x20d   :  { %v1037_v4 = vmax.f32 %v937_v0, 0.0 }
 0x20e   :  { %v1065_v5 = vpack.c.bf16 %v1039_v2, %v1038_v1 }
 0x20f   :  { %v1064_v6 = vpack.c.bf16 %v1037_v4, %v1036_v3  ;;  %v1633_v7 = vpop.f32.mrb[12].mxu1 }
 0x210   :  { %v958_v8 = vadd.f32 %v1633_v7, %v2029_v28  ;;  %v949_v9 = vpop.f32.mrb[13].mxu1 }
 0x211   :  { %v950_v10 = vadd.f32 %v2029_v28, %v949_v9  ;;  %v1634_v11 = vpop.f32.mrb[14].mxu1  ;;  %1667 = vmatprep.mubr.msk.bf16.mxu1 %vm818_vm1, %v1064_v6 }
 0x212   :  { %v961_v12 = vadd.f32 %v1634_v11, %v2029_v28  ;;  %v952_v13 = vpop.f32.mrb[15].mxu1  ;;  %1668 = vmatmul.mubr.msk.bf16.gmra.mrb[40].mxu1 %vm818_vm1, %v1065_v5  ;;  %v1042_v15 = vmax.f32 %v958_v8, 0.0 }
 0x213   :  { %v953_v14 = vadd.f32 %v2029_v28, %v952_v13  ;;  %v1040_v17 = vmax.f32 %v950_v10, 0.0 }
 0x214   :  { %v1043_v16 = vmax.f32 %v961_v12, 0.0 }
 0x215   :  { %v1041_v18 = vmax.f32 %v953_v14, 0.0  ;;  %v2082_v14 = vld [vmem:[%s2220_s8] ss:$0 sm:$0xff] }
 0x216   :  { %v1067_v19 = vpack.c.bf16 %v1043_v16, %v1042_v15 }
 0x217   :  { %v1066_v20 = vpack.c.bf16 %v1041_v18, %v1040_v17  ;;  %v1637_v21 = vpop.f32.mrb[16].mxu1 }
 0x218   :  { %v974_v22 = vadd.f32 %v1637_v21, %v2029_v28  ;;  %v965_v23 = vpop.f32.mrb[17].mxu1 }
 0x219   :  { %v966_v24 = vadd.f32 %v2029_v28, %v965_v23  ;;  %v1638_v25 = vpop.f32.mrb[18].mxu1  ;;  %1671 = vmatprep.mubr.msk.bf16.mxu1 %vm818_vm1, %v1066_v20 }
 0x21a   :  { %v977_v26 = vadd.f32 %v1638_v25, %v2029_v28  ;;  %v968_v27 = vpop.f32.mrb[19].mxu1  ;;  %1672 = vmatmul.mubr.msk.bf16.gmra.mrb[44].mxu1 %vm818_vm1, %v1067_v19  ;;  %v1046_v30 = vmax.f32 %v974_v22, 0.0 }
 0x21b   :  { %v969_v29 = vadd.f32 %v2029_v28, %v968_v27  ;;  %v1044_v39 = vmax.f32 %v966_v24, 0.0 }
 0x21c   :  { %v1047_v31 = vmax.f32 %v977_v26, 0.0 }
 0x21d   :  { %v1045_v32 = vmax.f32 %v969_v29, 0.0 }
 0x21e   :  { %v1069_v33 = vpack.c.bf16 %v1047_v31, %v1046_v30 }
 0x21f   :  { %v1068_v34 = vpack.c.bf16 %v1045_v32, %v1044_v39  ;;  %v1641_v35 = vpop.f32.mrb[20].mxu1 }
 0x220   :  { %v990_v36 = vadd.f32 %v1641_v35, %v2029_v28  ;;  %v981_v37 = vpop.f32.mrb[21].mxu1 }
 0x221   :  { %v982_v38 = vadd.f32 %v2029_v28, %v981_v37  ;;  %v1642_v40 = vpop.f32.mrb[22].mxu1  ;;  %1675 = vmatprep.mubr.msk.bf16.mxu1 %vm818_vm1, %v1068_v34 }
 0x222   :  { %v993_v41 = vadd.f32 %v1642_v40, %v2029_v28  ;;  %v984_v42 = vpop.f32.mrb[23].mxu1  ;;  %1676 = vmatmul.mubr.msk.bf16.gmra.mrb[48].mxu1 %vm818_vm1, %v1069_v33  ;;  %v1050_v44 = vmax.f32 %v990_v36, 0.0 }
 0x223   :  { %v985_v43 = vadd.f32 %v2029_v28, %v984_v42  ;;  %v1048_v46 = vmax.f32 %v982_v38, 0.0 }
 0x224   :  { %v1051_v45 = vmax.f32 %v993_v41, 0.0 }
 0x225   :  { %v1049_v47 = vmax.f32 %v985_v43, 0.0 }
 0x226   :  { %v1071_v48 = vpack.c.bf16 %v1051_v45, %v1050_v44 }
 0x227   :  { %v1070_v49 = vpack.c.bf16 %v1049_v47, %v1048_v46  ;;  %v1645_v50 = vpop.f32.mrb[24].mxu1 }
 0x228   :  { %v1006_v51 = vadd.f32 %v1645_v50, %v2029_v28  ;;  %v997_v52 = vpop.f32.mrb[25].mxu1 }
 0x229   :  { %v998_v53 = vadd.f32 %v2029_v28, %v997_v52  ;;  %v1646_v54 = vpop.f32.mrb[26].mxu1  ;;  %1679 = vmatprep.mubr.msk.bf16.mxu1 %vm818_vm1, %v1070_v49 }
 0x22a   :  { %v1009_v55 = vadd.f32 %v1646_v54, %v2029_v28  ;;  %v1000_v56 = vpop.f32.mrb[27].mxu1  ;;  %1680 = vmatmul.mubr.msk.bf16.gmra.mrb[52].mxu1 %vm818_vm1, %v1071_v48  ;;  %v1054_v58 = vmax.f32 %v1006_v51, 0.0 }
 0x22b   :  { %v1001_v57 = vadd.f32 %v2029_v28, %v1000_v56  ;;  %v1052_v60 = vmax.f32 %v998_v53, 0.0 }
 0x22c   :  { %v1055_v59 = vmax.f32 %v1009_v55, 0.0 }
 0x22d   :  { %v1053_v61 = vmax.f32 %v1001_v57, 0.0 }
 0x22e   :  { %v1073_v62 = vpack.c.bf16 %v1055_v59, %v1054_v58 }
 0x22f   :  { %v1072_v63 = vpack.c.bf16 %v1053_v61, %v1052_v60  ;;  %v1649_v0 = vpop.f32.mrb[28].mxu1 }
 0x230   :  { %v1022_v1 = vadd.f32 %v1649_v0, %v2029_v28  ;;  %v1013_v2 = vpop.f32.mrb[29].mxu1 }
 0x231   :  { %v1014_v3 = vadd.f32 %v2029_v28, %v1013_v2  ;;  %v1650_v4 = vpop.f32.mrb[30].mxu1  ;;  %1683 = vmatprep.mubr.msk.bf16.mxu1 %vm818_vm1, %v1072_v63 }
 0x232   :  { %v1025_v5 = vadd.f32 %v1650_v4, %v2029_v28  ;;  %v1016_v6 = vpop.f32.mrb[31].mxu1  ;;  %1684 = vmatmul.mubr.msk.bf16.gmra.mrb[56].mxu1 %vm818_vm1, %v1073_v62  ;;  %v1058_v8 = vmax.f32 %v1022_v1, 0.0 }
 0x233   :  { %v1017_v7 = vadd.f32 %v2029_v28, %v1016_v6  ;;  %v1056_v10 = vmax.f32 %v1014_v3, 0.0 }
 0x234   :  { %v1059_v9 = vmax.f32 %v1025_v5, 0.0 }
 0x235   :  { %v1057_v11 = vmax.f32 %v1017_v7, 0.0 }
 0x236   :  { %v1075_v12 = vpack.c.bf16 %v1059_v9, %v1058_v8 }
 0x237   :  { %v1074_v13 = vpack.c.bf16 %v1057_v11, %v1056_v10 }
 0x239   :  { %1687 = vmatprep.mubr.msk.bf16.mxu1 %vm818_vm1, %v1074_v13 }
 0x23a   :  { %1688 = vmatmul.mubr.msk.bf16.gmra.mrb[60].mxu1 %vm818_vm1, %v1075_v12 }
 0x2d5   :  { %v1661_v15 = vpop.f32.mrb[32].mxu1 }
 0x2d6   :  { %v1206_v16 = vadd.f32 %v1661_v15, %v2082_v14  ;;  %v1197_v17 = vpop.f32.mrb[33].mxu1 }
 0x2d7   :  { %v1198_v28 = vadd.f32 %v2082_v14, %v1197_v17  ;;  %v1662_v18 = vpop.f32.mrb[34].mxu1 }
 0x2d8   :  { %1326 = vst [vmem:[%s2221_s9 + $0x10] sm:$0xff] %v1206_v16  ;;  %v1209_v19 = vadd.f32 %v1662_v18, %v2082_v14  ;;  %v1200_v20 = vpop.f32.mrb[35].mxu1 }
 0x2d9   :  { %1324 = vst [vmem:[%s2221_s9] sm:$0xff] %v1198_v28  ;;  %v1201_v21 = vadd.f32 %v2082_v14, %v1200_v20 }
 0x2da   :  { %1327 = vst [vmem:[%s2221_s9 + $0x18] sm:$0xff] %v1209_v19 }
 0x2db   :  { %1325 = vst [vmem:[%s2221_s9 + $0x8] sm:$0xff] %v1201_v21 }
 0x2dd   :  { %v1665_v22 = vpop.f32.mrb[36].mxu1 }
 0x2de   :  { %v1222_v23 = vadd.f32 %v1665_v22, %v2082_v14  ;;  %v1213_v24 = vpop.f32.mrb[37].mxu1 }
 0x2df   :  { %v1214_v25 = vadd.f32 %v2082_v14, %v1213_v24  ;;  %v1666_v26 = vpop.f32.mrb[38].mxu1 }
 0x2e0   :  { %1330 = vst [vmem:[%s2221_s9 + $0x30] sm:$0xff] %v1222_v23  ;;  %v1225_v27 = vadd.f32 %v1666_v26, %v2082_v14  ;;  %v1216_v29 = vpop.f32.mrb[39].mxu1 }
 0x2e1   :  { %1328 = vst [vmem:[%s2221_s9 + $0x20] sm:$0xff] %v1214_v25  ;;  %v1217_v30 = vadd.f32 %v2082_v14, %v1216_v29 }
 0x2e2   :  { %1331 = vst [vmem:[%s2221_s9 + $0x38] sm:$0xff] %v1225_v27 }
 0x2e3   :  { %1329 = vst [vmem:[%s2221_s9 + $0x28] sm:$0xff] %v1217_v30 }
 0x2e5   :  { %v1669_v31 = vpop.f32.mrb[40].mxu1 }
 0x2e6   :  { %v1238_v39 = vadd.f32 %v1669_v31, %v2082_v14  ;;  %v1229_v32 = vpop.f32.mrb[41].mxu1 }
 0x2e7   :  { %v1230_v33 = vadd.f32 %v2082_v14, %v1229_v32  ;;  %v1670_v34 = vpop.f32.mrb[42].mxu1 }
 0x2e8   :  { %1334 = vst [vmem:[%s2221_s9 + $0x50] sm:$0xff] %v1238_v39  ;;  %v1241_v35 = vadd.f32 %v1670_v34, %v2082_v14  ;;  %v1232_v36 = vpop.f32.mrb[43].mxu1 }
 0x2e9   :  { %1332 = vst [vmem:[%s2221_s9 + $0x40] sm:$0xff] %v1230_v33  ;;  %v1233_v37 = vadd.f32 %v2082_v14, %v1232_v36 }
 0x2ea   :  { %1335 = vst [vmem:[%s2221_s9 + $0x58] sm:$0xff] %v1241_v35 }
 0x2eb   :  { %1333 = vst [vmem:[%s2221_s9 + $0x48] sm:$0xff] %v1233_v37 }
 0x2ed   :  { %v1673_v38 = vpop.f32.mrb[44].mxu1 }
 0x2ee   :  { %v1254_v40 = vadd.f32 %v1673_v38, %v2082_v14  ;;  %v1245_v41 = vpop.f32.mrb[45].mxu1 }
 0x2ef   :  { %v1246_v42 = vadd.f32 %v2082_v14, %v1245_v41  ;;  %v1674_v43 = vpop.f32.mrb[46].mxu1 }
 0x2f0   :  { %1338 = vst [vmem:[%s2221_s9 + $0x70] sm:$0xff] %v1254_v40  ;;  %v1257_v44 = vadd.f32 %v1674_v43, %v2082_v14  ;;  %v1248_v45 = vpop.f32.mrb[47].mxu1 }
 0x2f1   :  { %1336 = vst [vmem:[%s2221_s9 + $0x60] sm:$0xff] %v1246_v42  ;;  %v1249_v46 = vadd.f32 %v2082_v14, %v1248_v45 }
 0x2f2   :  { %1339 = vst [vmem:[%s2221_s9 + $0x78] sm:$0xff] %v1257_v44 }
 0x2f3   :  { %1337 = vst [vmem:[%s2221_s9 + $0x68] sm:$0xff] %v1249_v46 }
 0x2f5   :  { %v1677_v47 = vpop.f32.mrb[48].mxu1 }
 0x2f6   :  { %v1270_v48 = vadd.f32 %v1677_v47, %v2082_v14  ;;  %v1261_v49 = vpop.f32.mrb[49].mxu1 }
 0x2f7   :  { %v1262_v50 = vadd.f32 %v2082_v14, %v1261_v49  ;;  %v1678_v51 = vpop.f32.mrb[50].mxu1 }
 0x2f8   :  { %1342 = vst [vmem:[%s2221_s9 + $0x90] sm:$0xff] %v1270_v48  ;;  %v1273_v52 = vadd.f32 %v1678_v51, %v2082_v14  ;;  %v1264_v53 = vpop.f32.mrb[51].mxu1 }
 0x2f9   :  { %1340 = vst [vmem:[%s2221_s9 + $0x80] sm:$0xff] %v1262_v50  ;;  %v1265_v54 = vadd.f32 %v2082_v14, %v1264_v53 }
 0x2fa   :  { %1343 = vst [vmem:[%s2221_s9 + $0x98] sm:$0xff] %v1273_v52 }
 0x2fb   :  { %1341 = vst [vmem:[%s2221_s9 + $0x88] sm:$0xff] %v1265_v54 }
 0x2fd   :  { %v1681_v55 = vpop.f32.mrb[52].mxu1 }
 0x2fe   :  { %v1286_v56 = vadd.f32 %v1681_v55, %v2082_v14  ;;  %v1277_v57 = vpop.f32.mrb[53].mxu1 }
 0x2ff   :  { %v1278_v58 = vadd.f32 %v2082_v14, %v1277_v57  ;;  %v1682_v59 = vpop.f32.mrb[54].mxu1 }
 0x300   :  { %1346 = vst [vmem:[%s2221_s9 + $0xb0] sm:$0xff] %v1286_v56  ;;  %v1289_v60 = vadd.f32 %v1682_v59, %v2082_v14  ;;  %v1280_v61 = vpop.f32.mrb[55].mxu1 }
 0x301   :  { %1344 = vst [vmem:[%s2221_s9 + $0xa0] sm:$0xff] %v1278_v58  ;;  %v1281_v62 = vadd.f32 %v2082_v14, %v1280_v61 }
 0x302   :  { %1347 = vst [vmem:[%s2221_s9 + $0xb8] sm:$0xff] %v1289_v60 }
 0x303   :  { %1345 = vst [vmem:[%s2221_s9 + $0xa8] sm:$0xff] %v1281_v62 }
 0x305   :  { %v1685_v63 = vpop.f32.mrb[56].mxu1 }
 0x306   :  { %v1302_v0 = vadd.f32 %v1685_v63, %v2082_v14  ;;  %v1293_v1 = vpop.f32.mrb[57].mxu1 }
 0x307   :  { %v1294_v2 = vadd.f32 %v2082_v14, %v1293_v1  ;;  %v1686_v3 = vpop.f32.mrb[58].mxu1 }
 0x308   :  { %1350 = vst [vmem:[%s2221_s9 + $0xd0] sm:$0xff] %v1302_v0  ;;  %v1305_v4 = vadd.f32 %v1686_v3, %v2082_v14  ;;  %v1296_v5 = vpop.f32.mrb[59].mxu1 }
 0x309   :  { %1348 = vst [vmem:[%s2221_s9 + $0xc0] sm:$0xff] %v1294_v2  ;;  %v1297_v6 = vadd.f32 %v2082_v14, %v1296_v5 }
 0x30a   :  { %1351 = vst [vmem:[%s2221_s9 + $0xd8] sm:$0xff] %v1305_v4 }
 0x30b   :  { %1349 = vst [vmem:[%s2221_s9 + $0xc8] sm:$0xff] %v1297_v6 }
 0x30d   :  { %v1689_v7 = vpop.f32.mrb[60].mxu1 }
 0x30e   :  { %v1318_v8 = vadd.f32 %v1689_v7, %v2082_v14  ;;  %v1309_v9 = vpop.f32.mrb[61].mxu1 }
 0x30f   :  { %v1310_v10 = vadd.f32 %v2082_v14, %v1309_v9  ;;  %v1690_v11 = vpop.f32.mrb[62].mxu1 }
 0x310   :  { %1354 = vst [vmem:[%s2221_s9 + $0xf0] sm:$0xff] %v1318_v8  ;;  %v1321_v12 = vadd.f32 %v1690_v11, %v2082_v14  ;;  %v1312_v13 = vpop.f32.mrb[63].mxu1 }
 0x311   :  { %1352 = vst [vmem:[%s2221_s9 + $0xe0] sm:$0xff] %v1310_v10  ;;  %v1313_v15 = vadd.f32 %v2082_v14, %v1312_v13 }
 0x312   :  { %1355 = vst [vmem:[%s2221_s9 + $0xf8] sm:$0xff] %v1321_v12 }
 0x313   :  { %1353 = vst [vmem:[%s2221_s9 + $0xe8] sm:$0xff] %v1313_v15 }

</bundles_post_ra>
